<compile_context>
chip_gen: v6e
topology: v6e:2x2x1
jax: 0.10.0
libtpu: 0.0.40
codegen_flags: <defaults>
</compile_context>

<pallas_src>
import math

import jax
import jax.numpy as jnp
from jax.experimental import pallas as pl
from jax.experimental.pallas import tpu as pltpu

_LANE = 128
_SMALL_BYTES = 256 * 1024            # per-input fast-path threshold (single block)
_WIDE_CANDIDATES = (4096, 2048, 1024, 512, 256, 128)


def _cdiv(a, b):
    return -(-a // b)


def _round_up(x, m):
    return _cdiv(x, m) * m


def _vmem_config():
    """Return (vmem_limit_bytes, per-grid-step tile budget) for this chip generation."""
    try:
        cap = int(pltpu.get_tpu_info().vmem_capacity_bytes)
    except Exception:                 # not on TPU / API unavailable: assume 128 MiB class
        cap = 128 * 1024 * 1024
    if cap <= 80 * 1024 * 1024:
        # v7x-class TensorCore: 64 MiB physical VMEM -> keep headroom.
        return 44 * 1024 * 1024, 28 * 1024 * 1024
    # v5e / v6e: 128 MiB physical VMEM.
    return 64 * 1024 * 1024, 44 * 1024 * 1024


def _make_kernel(n, weighted):
    def kernel(w_ref, *refs):
        # w_ref: SMEM (n-1,) f32 scalar-prefetch; refs = (x_0 .. x_{n-1}, out)
        x_refs, o_ref = refs[:n], refs[n]
        # f32 accumulation (kernel is HBM-bound; the upcast cost is hidden).
        acc = x_refs[0][...].astype(jnp.float32)
        for i in range(n - 1):                       # static unroll, n is small
            xi = x_refs[i + 1][...].astype(jnp.float32)
            if weighted:
                xi = xi * w_ref[i]
            acc = acc + xi
        o_ref[...] = acc.astype(o_ref.dtype)
    return kernel


def _pick_wide(main):
    """Largest lane-dense width that divides `main`, preferring >=8 sublanes."""
    for cand in _WIDE_CANDIDATES:
        if main % cand == 0 and main // cand >= 8:
            return cand
    for cand in _WIDE_CANDIDATES:
        if main % cand == 0:
            return cand
    return _LANE                      # unreachable: main is a multiple of 128


def _pick_tm(rows, sub, tm_budget):
    """Row-tile size and grid length: sub-aligned, divisor-preferring, even grid."""
    tm = max(sub, (tm_budget // sub) * sub)
    tm = min(tm, _round_up(rows, sub))
    # Prefer a tm that divides rows exactly (no masked partial last block),
    # searching within ~25% below the budgeted tm.
    lo = max(sub, (int(tm * 0.75) // sub) * sub)
    for cand in range(tm, lo - 1, -sub):
        if rows % cand == 0:
            tm = cand
            break
    grid = _cdiv(rows, tm)
    # Megacore balance (v7x has 2 TensorCores): force an even grid with
    # (nearly) equal block sizes.  Harmless on single-core chips.
    if rows >= 2 * sub and (grid < 2 or grid % 2):
        g = max(2, grid + (grid % 2))
        for _ in range(4):
            tm_try = max(sub, _round_up(_cdiv(rows, g), sub))
            g_try = _cdiv(rows, tm_try)
            tm, grid = tm_try, g_try
            if g_try % 2 == 0:
                break
            g = g_try + 1
    return tm, grid


def sum_module(xs, weight=False):
    """Replicates Sum(n, weight).forward(xs) for a list/tuple of n same-shaped arrays."""
    n = len(xs)
    assert n >= 2, "Sum needs at least two inputs"
    shape, dtype = xs[0].shape, xs[0].dtype
    for x in xs[1:]:
        assert x.shape == shape and x.dtype == dtype, "all inputs must share shape/dtype"

    itemsize = jnp.dtype(dtype).itemsize
    total = math.prod(shape)

    # Forward weights: sigmoid(w_param) * 2 with w_param = -arange(1, n) / 2.
    # TODO(synk): nn.Parameter training/grad state is out of scope; weights are frozen at init.
    if weight:
        w = jax.nn.sigmoid(-jnp.arange(1.0, n, dtype=jnp.float32) / 2.0) * 2.0
    else:
        w = jnp.ones((n - 1,), dtype=jnp.float32)    # unused by the kernel body

    def _jnp_combine(parts):
        y = parts[0].astype(jnp.float32)
        for i in range(n - 1):
            yi = parts[i + 1].astype(jnp.float32)
            if weight:
                yi = yi * w[i]
            y = y + yi
        return y.astype(dtype)

    # Lane-aligned main range handled by the kernel; tiny (<128 elem) tail in jnp.
    main = (total // _LANE) * _LANE
    tail = total - main
    if main == 0:                                    # degenerate: fewer than 128 elements
        return _jnp_combine([x.reshape(-1) for x in xs]).reshape(shape)

    flats = [x.reshape(-1) for x in xs]
    mains = flats if tail == 0 else [f[:main] for f in flats]

    wide = _pick_wide(main)
    rows = main // wide
    views = [f.reshape(rows, wide) for f in mains]   # zero-copy lane-dense 2-D views

    kernel = _make_kernel(n, weight)
    vmem_limit, tile_budget = _vmem_config()
    cparams = pltpu.CompilerParams(
        dimension_semantics=("parallel",),           # lets v7x shard the grid across 2 TCs
        vmem_limit_bytes=vmem_limit,
    )
    cost = pl.CostEstimate(
        flops=2 * (n - 1) * main,
        transcendentals=0,
        bytes_accessed=(n + 1) * main * itemsize,
    )

    if main * itemsize <= _SMALL_BYTES:
        # ---------- fast path: single lane-dense full-array block ----------
        spec = pl.BlockSpec((rows, wide), lambda i, w_ref: (0, 0))
        grid = (1,)
    else:
        # ---------- general path: (tm, wide) tiles from a generation-aware budget.
        # Per row of tm: 2 pipeline buffers x (n+1) operands in the input dtype,
        # plus ~2 f32 upcast temporaries (acc + xi).
        sub = max(8, 32 // itemsize)                 # sublane alignment for packed dtypes
        denom = wide * (2 * (n + 1) * itemsize + 2 * 4)
        tm, nsteps = _pick_tm(rows, sub, max(sub, tile_budget // denom))
        spec = pl.BlockSpec((tm, wide), lambda i, w_ref: (i, 0))
        grid = (nsteps,)

    out = pl.pallas_call(
        kernel,
        out_shape=jax.ShapeDtypeStruct((rows, wide), dtype),
        grid_spec=pltpu.PrefetchScalarGridSpec(
            num_scalar_prefetch=1,
            grid=grid,
            in_specs=[spec] * n,
            out_specs=spec,
        ),
        compiler_params=cparams,
        cost_estimate=cost,
    )(w, *views)

    out_flat = out.reshape(-1)
    if tail:
        tail_out = _jnp_combine([f[main:] for f in flats])
        out_flat = jnp.concatenate([out_flat, tail_out])
    return out_flat.reshape(shape)


if __name__ == "__main__":
    key = jax.random.PRNGKey(0)
    n = 3
    keys = jax.random.split(key, 3 * n)

    w_param = -jnp.arange(1.0, n, dtype=jnp.float32) / 2.0
    w_fwd = jax.nn.sigmoid(w_param) * 2.0

    def ref_weighted(xs):
        y = xs[0]
        for i in range(n - 1):
            y = y + xs[i + 1] * w_fwd[i]
        return y

    def ref_plain(xs):
        y = xs[0]
        for i in range(n - 1):
            y = y + xs[i + 1]
        return y

    # Small NCHW case (exercises the lane-dense single-block fast path).
    shape_small = (2, 4, 16, 16)
    xs_small = [jax.random.normal(k, shape_small, dtype=jnp.float32) for k in keys[:n]]
    y = jax.block_until_ready(sum_module(xs_small, weight=True))
    assert y.shape == shape_small and y.dtype == xs_small[0].dtype
    assert jnp.allclose(y, ref_weighted(xs_small), atol=1e-5, rtol=1e-5)
    y2 = jax.block_until_ready(sum_module(xs_small, weight=False))
    assert jnp.allclose(y2, ref_plain(xs_small), atol=1e-5, rtol=1e-5)

    # Larger NCHW case (exercises the tiled path with an even, balanced grid).
    shape_big = (4, 32, 64, 64)
    xs_big = [jax.random.normal(k, shape_big, dtype=jnp.float32) for k in keys[n:2 * n]]
    y3 = jax.block_until_ready(sum_module(xs_big, weight=True))
    assert y3.shape == shape_big
    assert jnp.allclose(y3, ref_weighted(xs_big), atol=1e-5, rtol=1e-5)
    y4 = jax.block_until_ready(sum_module(xs_big, weight=False))
    assert jnp.allclose(y4, ref_plain(xs_big), atol=1e-5, rtol=1e-5)

    # Odd element count (exercises the lane-aligned prefix + jnp tail path, no padding).
    shape_odd = (2, 3, 67)
    xs_odd = [jax.random.normal(k, shape_odd, dtype=jnp.float32) for k in keys[2 * n:]]
    y5 = jax.block_until_ready(sum_module(xs_odd, weight=True))
    assert y5.shape == shape_odd
    assert jnp.allclose(y5, ref_weighted(xs_odd), atol=1e-5, rtol=1e-5)

    print("KERNEL_OK")
</pallas_src>

<mosaic_0001>
module attributes {stable_mosaic.version = 11 : i64} {
  func.func @kernel(%arg0: i32, %arg1: memref<2xf32, #tpu.memory_space<smem>>, %arg2: memref<8x256xf32, #tpu.memory_space<vmem>>, %arg3: memref<8x256xf32, #tpu.memory_space<vmem>>, %arg4: memref<8x256xf32, #tpu.memory_space<vmem>>, %arg5: memref<8x256xf32, #tpu.memory_space<vmem>>) attributes {dimension_semantics = [#tpu.dimension_semantics<parallel>], iteration_bounds = array<i64: 1>, scalar_prefetch = 1 : i64, scratch_operands = 0 : i64, tpu.core_type = #tpu.core_type<tc>, window_params = [{pipeline_mode = #tpu.pipeline_mode<synchronous>, transform_indices = @transform_0, window_bounds = array<i64: 8, 256>}, {pipeline_mode = #tpu.pipeline_mode<synchronous>, transform_indices = @transform_1, window_bounds = array<i64: 8, 256>}, {pipeline_mode = #tpu.pipeline_mode<synchronous>, transform_indices = @transform_2, window_bounds = array<i64: 8, 256>}, {pipeline_mode = #tpu.pipeline_mode<synchronous>, transform_indices = @transform_3, window_bounds = array<i64: 8, 256>}]} {
    %c0 = arith.constant 0 : index
    %c0_0 = arith.constant 0 : index
    %0 = vector.load %arg2[%c0, %c0_0] : memref<8x256xf32, #tpu.memory_space<vmem>>, vector<8x256xf32>
    %c0_1 = arith.constant 0 : index
    %c0_2 = arith.constant 0 : index
    %1 = vector.load %arg3[%c0_1, %c0_2] : memref<8x256xf32, #tpu.memory_space<vmem>>, vector<8x256xf32>
    %c0_3 = arith.constant 0 : index
    %2 = memref.load %arg1[%c0_3] : memref<2xf32, #tpu.memory_space<smem>>
    %3 = vector.broadcast %2 : f32 to vector<8x256xf32>
    %4 = arith.mulf %1, %3 : vector<8x256xf32>
    %5 = arith.addf %0, %4 : vector<8x256xf32>
    %c0_4 = arith.constant 0 : index
    %c0_5 = arith.constant 0 : index
    %6 = vector.load %arg4[%c0_4, %c0_5] : memref<8x256xf32, #tpu.memory_space<vmem>>, vector<8x256xf32>
    %c1 = arith.constant 1 : index
    %7 = memref.load %arg1[%c1] : memref<2xf32, #tpu.memory_space<smem>>
    %8 = vector.broadcast %7 : f32 to vector<8x256xf32>
    %9 = arith.mulf %6, %8 : vector<8x256xf32>
    %10 = arith.addf %5, %9 : vector<8x256xf32>
    %c0_6 = arith.constant 0 : index
    %c0_7 = arith.constant 0 : index
    %11 = vector.load %arg5[%c0_6, %c0_7] : memref<8x256xf32, #tpu.memory_space<vmem>>, vector<8x256xf32>
    tpu.vector_store %arg5[%c0_6, %c0_7], %10 {strides = array<i32>} : memref<8x256xf32, #tpu.memory_space<vmem>>, vector<8x256xf32>,
    return
  }
  func.func @transform_0(%arg0: i32, %arg1: memref<2xf32, #tpu.memory_space<smem>>) -> (i32, i32) {
    %c0_i32 = arith.constant 0 : i32
    %c0_i32_0 = arith.constant 0 : i32
    %c0_i32_1 = arith.constant 0 : i32
    return %c0_i32, %c0_i32_0 : i32, i32
  }
  func.func @transform_1(%arg0: i32, %arg1: memref<2xf32, #tpu.memory_space<smem>>) -> (i32, i32) {
    %c0_i32 = arith.constant 0 : i32
    %c0_i32_0 = arith.constant 0 : i32
    %c0_i32_1 = arith.constant 0 : i32
    return %c0_i32, %c0_i32_0 : i32, i32
  }
  func.func @transform_2(%arg0: i32, %arg1: memref<2xf32, #tpu.memory_space<smem>>) -> (i32, i32) {
    %c0_i32 = arith.constant 0 : i32
    %c0_i32_0 = arith.constant 0 : i32
    %c0_i32_1 = arith.constant 0 : i32
    return %c0_i32, %c0_i32_0 : i32, i32
  }
  func.func @transform_3(%arg0: i32, %arg1: memref<2xf32, #tpu.memory_space<smem>>) -> (i32, i32) {
    %c0_i32 = arith.constant 0 : i32
    %c0_i32_0 = arith.constant 0 : i32
    %c0_i32_1 = arith.constant 0 : i32
    return %c0_i32, %c0_i32_0 : i32, i32
  }
}

</mosaic_0001>

<bundles_post_ra>
// kernel: tpu_custom_call.1
= control target key start
LH: loop header
LB: loop body
LE: loop exit
PB: predicated region body
PF: predicated region fallthrough
CT: control target
= control target key end

     0   :  { %s193_s15 = smov [#allocation3]   ;;  %s238_s0 = inlined_call_operand.hbm [shape: f32[2], index: 0, kind: input, shape index: {}]   ;;  %s239_s1 = inlined_call_operand.hbm [shape: f32[8,256], index: 1, kind: input, shape index: {}]   ;;  %s240_s2 = inlined_call_operand.hbm [shape: f32[8,256], index: 2, kind: input, shape index: {}]   ;;  %s241_s3 = inlined_call_operand.hbm [shape: f32[8,256], index: 3, kind: input, shape index: {}]   ;;  %s242_s4 = inlined_call_operand.hbm [shape: f32[8,256], index: 4, kind: output, shape index: {}]  }
   0x1   :  { %10 = dma.hbm_to_smem %s238_s0, 16, %s193_s15, [#allocation2] }
   0x2   :  { %185 = dma.done.wait [#allocation2], 16 }
   0x3   :  { %186 = vsyncadd [#allocation2], 4294967280 }
   0x4   :  { %12 = sfence }
   0x5   :  { %13 = vsyncpa [#allocation5], 0 }
   0x6   :  { %14 = vsyncpa [#allocation8], 0 }
   0x7   :  { %15 = vsyncpa [#allocation6], 0  ;;  %s194_s18 = smov [#allocation7]   ;;  %s195_s20 = smov [#allocation4]  }
   0x8   :  { %s32_s19 = sshll.u32 %s194_s18, 4  ;;  %s22_s21 = sshll.u32 %s195_s20, 4  ;;  %s33_s19 = int_to_ptr.vmem [resolvable:$true] %s32_s19  ;;  %s23_s21 = int_to_ptr.vmem [resolvable:$true] %s22_s21 }
   0x9   :  { %s113_s22 = scalar_lea.vmem %s33_s19, 256  ;;  %p118_p1 = scmp.lt.s32.totalorder %s33_s19, %s33_s19 }
   0xa   :  { %p114_p0 = scmp.ne.s32.totalorder %s33_s19, %s113_s22  ;;  %p119_p2 = scmp.lt.s32.totalorder %s113_s22, %s113_s22 }
   0xc   :  { %p120_p3 = por %p119_p2, %p118_p1 }
   0xe   :  { %p121_p4 = pnand %p120_p3, %p114_p0 }
  0x10   :  { %124 = shalt.err (!%p121_p4)
}
  0x11   :  { %35 = dma.hbm_to_vmem [thread:$0]  %s240_s2, 256, %s33_s19, [#allocation8]  }
  0x12   :  { %s133_s24 = scalar_lea.vmem %s23_s21, 256  ;;  %p138_p6 = scmp.lt.s32.totalorder %s23_s21, %s23_s21 }
  0x13   :  { %p134_p5 = scmp.ne.s32.totalorder %s23_s21, %s133_s24  ;;  %p139_p7 = scmp.lt.s32.totalorder %s133_s24, %s133_s24 }
  0x15   :  { %p140_p8 = por %p139_p7, %p138_p6 }
  0x17   :  { %p141_p9 = pnand %p140_p8, %p134_p5 }
  0x19   :  { %144 = shalt.err (!%p141_p9)
}
  0x1a   :  { %25 = dma.hbm_to_vmem [thread:$0]  %s239_s1, 256, %s23_s21, [#allocation5]  }
  0x1b   :  { %s196_s27 = smov [#allocation9]  }
  0x1c   :  { %s42_s28 = sshll.u32 %s196_s27, 4  ;;  %s43_s28 = int_to_ptr.vmem [resolvable:$true] %s42_s28 }
  0x1d   :  { %s153_s29 = scalar_lea.vmem %s43_s28, 256  ;;  %p158_p11 = scmp.lt.s32.totalorder %s43_s28, %s43_s28 }
  0x1e   :  { %p154_p10 = scmp.ne.s32.totalorder %s43_s28, %s153_s29  ;;  %p159_p12 = scmp.lt.s32.totalorder %s153_s29, %s153_s29 }
  0x20   :  { %p160_p13 = por %p159_p12, %p158_p11 }
  0x22   :  { %p161_p0 = pnand %p160_p13, %p154_p10 }
  0x24   :  { %164 = shalt.err (!%p161_p0)
}
  0x25   :  { %45 = dma.hbm_to_vmem [thread:$0]  %s241_s3, 256, %s43_s28, [#allocation8]  }
  0x26   :  { %187 = dma.done.wait [#allocation5], 256  }
  0x27   :  { %188 = vsyncadd [#allocation5], 4294967040 }
  0x28   :  { %189 = dma.done.wait [#allocation8], 512  }
  0x29   :  { %190 = vsyncadd [#allocation8], 4294966784  ;;  %s59_s5 = sld [smem:[#allocation3]]  ;;  %v55_v0 = vld [vmem:[#allocation4] sm:$0xff]  ;;  %v57_v1 = vld [vmem:[#allocation7] sm:$0xff]  ;;  %s197_s3 = smov [#allocation10]  }
  0x2a   :  { %s91_s1 = sld [smem:[#allocation3 + $0x1]]  ;;  %v65_v3 = vld [vmem:[#allocation9] sm:$0xff]  ;;  %v56_v6 = vld [vmem:[#allocation4 + $0x8] sm:$0xff]  ;;  %v58_v7 = vld [vmem:[#allocation7 + $0x8] sm:$0xff]  ;;  %s81_s6 = sshll.u32 %s197_s3, 4  ;;  %s82_s6 = int_to_ptr.vmem [resolvable:$true] %s81_s6 }
  0x2b   :  { %v66_v8 = vld [vmem:[#allocation9 + $0x8] sm:$0xff]  ;;  %s165_s7 = scalar_lea.vmem %s82_s6, 256  ;;  %p170_p2 = scmp.lt.s32.totalorder %s82_s6, %s82_s6 }
  0x2c   :  { %p166_p1 = scmp.ne.s32.totalorder %s82_s6, %s165_s7  ;;  %p171_p3 = scmp.lt.s32.totalorder %s165_s7, %s165_s7 }
  0x2e   :  { %p172_p4 = por %p171_p3, %p170_p2 }
  0x2f   :  { %v60_v2 = vstv %s59_s5 }
  0x30   :  { %v61_v4 = vmul.f32 %v60_v2, %v57_v1  ;;  %v68_v5 = vstv %s91_s1  ;;  %v62_v10 = vmul.f32 %v60_v2, %v58_v7  ;;  %p173_p5 = pnand %p172_p4, %p166_p1 }
  0x31   :  { %v69_v9 = vmul.f32 %v68_v5, %v65_v3  ;;  %v70_v11 = vmul.f32 %v68_v5, %v66_v8 }
  0x32   :  { %v63_v12 = vadd.f32 %v61_v4, %v55_v0  ;;  %v64_v13 = vadd.f32 %v62_v10, %v56_v6 }
  0x34   :  { %v71_v14 = vadd.f32 %v69_v9, %v63_v12  ;;  %v72_v15 = vadd.f32 %v70_v11, %v64_v13 }
  0x36   :  { %73 = vst [vmem:[#allocation10] sm:$0xff] %v71_v14  ;;  %74 = vst [vmem:[#allocation10 + $0x8] sm:$0xff] %v72_v15 }
  0x37   :  { %176 = shalt.err (!%p173_p5)
}
  0x38   :  { %84 = dma.vmem_to_hbm [thread:$0]  %s82_s6, 256, %s242_s4, [#allocation6]  }
  0x39   :  { %191 = dma.done.wait [#allocation6], 256  }
  0x3a   :  { %192 = vsyncadd [#allocation6], 4294967040 }
  0x3b   :  { %88 = vsyncpa [#allocation5], 1 }
  0x3c   :  { %89 = vsyncpa [#allocation8], 1 }
  0x3d   :  { %90 = vsyncpa [#allocation6], 1 }

</bundles_post_ra>
